<compile_context>
chip_gen: v5e
topology: v5e:2x2
jax: 0.10.0
libtpu: 0.0.40
codegen_flags: <defaults>
</compile_context>

<pallas_src>
import functools

import jax
import jax.numpy as jnp
from jax.experimental import pallas as pl
from jax.experimental.pallas import tpu as pltpu


def conv_bn_act_kernel(x_ref, w_ref, bias_ref, o_ref, *,
                       KH, Ho, Wo, Cout, WpCin, stride, act):
    """nb samples: KH banded MXU matmuls -> f32 bias + activation -> lane-dense store.

    x_ref    : (nb, Hp, Wp*Cin)       compute dtype (bf16)
    w_ref    : (KH, Wp*Cin, Wo*Cout)  compute dtype, block-banded, BN scale folded in
    bias_ref : (1, Wo*Cout)           f32 folded-BN bias (tiled over wo)
    o_ref    : (nb, Ho, Wo*Cout)
    """
    nb = x_ref.shape[0]
    acc = jnp.zeros((nb * Ho, Wo * Cout), jnp.float32)
    for kh in range(KH):
        if stride == 1:
            sl = x_ref[:, pl.ds(kh, Ho), :]                 # (nb, Ho, Wp*Cin)
        else:
            sl = x_ref[:, pl.ds(kh, Ho, stride), :]         # strided sublane slice
        lhs = sl.reshape(nb * Ho, WpCin)                    # layout-preserving (Ho % 8 == 0)
        acc = acc + jnp.dot(lhs, w_ref[kh],
                            preferred_element_type=jnp.float32)

    # Epilogue in f32: folded-BN bias + activation (BN scale already in weights).
    y = acc + bias_ref[...]
    if act == "relu":
        y = jnp.maximum(y, 0.0)
    elif act == "silu":
        y = y * jax.nn.sigmoid(y)

    o_ref[...] = y.reshape(nb, Ho, Wo * Cout).astype(o_ref.dtype)


def _pick_samples_per_block(N, per_sample_bytes, max_block_bytes=4 << 20):
    """Largest divisor of N that keeps >=2 grid steps (v7x dual TC) and bounded VMEM."""
    best = 1
    for nb in range(1, N + 1):
        if N % nb:
            continue
        if nb * per_sample_bytes > max_block_bytes:
            break
        if N // nb >= 2 or N == 1:
            best = nb
    return best


def conv_module_forward(x_nchw, weight, gamma, beta, running_mean, running_var,
                        *, stride=1, padding=0, eps=1e-5, act="silu",
                        compute_dtype=jnp.bfloat16):
    """ConvModule forward: Conv2d (no bias) -> BatchNorm2d (eval) -> activation."""
    assert act in ("silu", "relu", "identity"), f"unsupported act: {act}"
    # TODO(synk): groups > 1 (grouped / depthwise conv) is not implemented.
    # TODO(synk): training-mode BatchNorm (batch statistics) needs an extra reduction
    #             pass; eval-mode running-stat semantics are implemented here.
    N, Cin, H, W = x_nchw.shape
    Cout, Cin_w, KH, KW = weight.shape                       # PyTorch OIHW layout
    assert Cin_w == Cin, "groups != 1 not supported"
    Ho = (H + 2 * padding - KH) // stride + 1
    Wo = (W + 2 * padding - KW) // stride + 1
    Hp, Wp = H + 2 * padding, W + 2 * padding
    WpCin = Wp * Cin
    WoCout = Wo * Cout

    # --- One-time wrapper work: BN folding + block-banded weight construction. ---
    scale = (gamma / jnp.sqrt(running_var + eps)).astype(jnp.float32)   # (Cout,)
    bias = (beta - running_mean * scale).astype(jnp.float32)            # (Cout,)
    w_folded = jnp.transpose(weight, (2, 3, 1, 0)).astype(jnp.float32) * scale  # (KH,KW,Cin,Cout)

    # Wbig[kh, (wo*stride+kw)*Cin + ci, wo*Cout + co] = w_folded[kh, kw, ci, co]
    Wbig = jnp.zeros((KH, WpCin, WoCout), jnp.float32)
    wo_ar = jnp.arange(Wo)
    ci_ar = jnp.arange(Cin)
    co_ar = jnp.arange(Cout)
    for kh in range(KH):
        for kw in range(KW):
            row_i = (wo_ar * stride + kw)[:, None] * Cin + ci_ar[None, :]   # (Wo, Cin)
            col_i = wo_ar[:, None] * Cout + co_ar[None, :]                  # (Wo, Cout)
            blk = jnp.broadcast_to(w_folded[kh, kw][None], (Wo, Cin, Cout))
            Wbig = Wbig.at[kh, row_i[:, :, None], col_i[:, None, :]].set(blk)
    Wbig = Wbig.astype(compute_dtype)

    bias_big = jnp.tile(bias, Wo).reshape(1, WoCout)                     # f32, per-lane bias

    # Input: NCHW -> padded NHWC with (W, C) fused onto lanes.
    x = jnp.transpose(x_nchw, (0, 2, 3, 1))
    x = jnp.pad(x, ((0, 0), (padding, padding), (padding, padding), (0, 0)))
    x = x.reshape(N, Hp, WpCin).astype(compute_dtype)

    out_dtype = x_nchw.dtype
    c_itemsize = jnp.dtype(compute_dtype).itemsize
    per_sample_bytes = (Hp * WpCin * c_itemsize
                        + Ho * WoCout * jnp.dtype(out_dtype).itemsize)
    nb = _pick_samples_per_block(N, per_sample_bytes)
    grid_n = N // nb

    kernel = functools.partial(conv_bn_act_kernel, KH=KH, Ho=Ho, Wo=Wo, Cout=Cout,
                               WpCin=WpCin, stride=stride, act=act)

    flops = 2 * N * Ho * Wo * KH * KW * Cin * Cout
    transcendentals = N * Ho * Wo * Cout if act == "silu" else 0
    bytes_accessed = (x.size * c_itemsize + Wbig.size * c_itemsize
                      + bias_big.size * 4
                      + N * Ho * WoCout * jnp.dtype(out_dtype).itemsize)

    out2 = pl.pallas_call(
        kernel,
        out_shape=jax.ShapeDtypeStruct((N, Ho, WoCout), out_dtype),
        grid_spec=pltpu.PrefetchScalarGridSpec(
            num_scalar_prefetch=0,
            grid=(grid_n,),
            in_specs=[
                pl.BlockSpec((nb, Hp, WpCin), lambda n: (n, 0, 0)),
                pl.BlockSpec((KH, WpCin, WoCout), lambda n: (0, 0, 0)),   # resident
                pl.BlockSpec((1, WoCout), lambda n: (0, 0)),              # resident
            ],
            out_specs=pl.BlockSpec((nb, Ho, WoCout), lambda n: (n, 0, 0)),
        ),
        compiler_params=pltpu.CompilerParams(
            dimension_semantics=("parallel",)),
        cost_estimate=pl.CostEstimate(
            flops=flops, transcendentals=transcendentals,
            bytes_accessed=bytes_accessed),
    )(x, Wbig, bias_big)

    out = out2.reshape(N, Ho, Wo, Cout)
    return jnp.transpose(out, (0, 3, 1, 2))                              # back to NCHW


def _reference(x_nchw, weight, gamma, beta, running_mean, running_var,
               *, stride, padding, eps, act, compute_dtype):
    """Pure-JAX reference with the same bf16-operand / f32-accumulate math."""
    scale = gamma / jnp.sqrt(running_var + eps)
    bias = beta - running_mean * scale
    w_folded = (weight * scale[:, None, None, None]).astype(compute_dtype)
    y = jax.lax.conv_general_dilated(
        x_nchw.astype(compute_dtype), w_folded, window_strides=(stride, stride),
        padding=[(padding, padding), (padding, padding)],
        dimension_numbers=("NCHW", "OIHW", "NCHW"),
        preferred_element_type=jnp.float32)
    y = y + bias.reshape(1, -1, 1, 1)
    if act == "relu":
        y = jnp.maximum(y, 0.0)
    elif act == "silu":
        y = y * jax.nn.sigmoid(y)
    return y.astype(x_nchw.dtype)


if __name__ == "__main__":
    # ConvModule(in_channels=4, out_channels=8, kernel_size=3, stride=1,
    #            padding=1, norm_cfg={'type': 'BN'}, act_cfg={'type': 'SiLU'})
    N, Cin, H, W = 2, 4, 16, 16
    Cout, K, stride, padding = 8, 3, 1, 1

    key = jax.random.PRNGKey(0)
    kx, kw_, kg, kb, km, kv = jax.random.split(key, 6)

    x = jax.random.normal(kx, (N, Cin, H, W), jnp.float32)
    weight = jax.random.normal(kw_, (Cout, Cin, K, K), jnp.float32) * 0.1
    gamma = 1.0 + 0.1 * jax.random.normal(kg, (Cout,), jnp.float32)
    beta = 0.1 * jax.random.normal(kb, (Cout,), jnp.float32)
    running_mean = 0.1 * jax.random.normal(km, (Cout,), jnp.float32)
    running_var = 0.5 + jnp.abs(jax.random.normal(kv, (Cout,), jnp.float32))

    out = conv_module_forward(x, weight, gamma, beta, running_mean, running_var,
                              stride=stride, padding=padding, eps=1e-5, act="silu")
    out = jax.block_until_ready(out)

    ref = _reference(x, weight, gamma, beta, running_mean, running_var,
                     stride=stride, padding=padding, eps=1e-5, act="silu",
                     compute_dtype=jnp.bfloat16)
    assert out.shape == (N, Cout, H, W)
    err = jnp.max(jnp.abs(out - ref))
    assert jnp.allclose(out, ref, atol=2e-2, rtol=2e-2), f"max abs err = {err}"

    print("KERNEL_OK")
</pallas_src>

<mosaic_0001>
module attributes {stable_mosaic.version = 11 : i64} {
  func.func @conv_bn_act_kernel(%arg0: i32, %arg1: memref<1x18x72xbf16, #tpu.memory_space<vmem>>, %arg2: memref<3x72x128xbf16, #tpu.memory_space<vmem>>, %arg3: memref<1x128xf32, #tpu.memory_space<vmem>>, %arg4: memref<1x16x128xf32, #tpu.memory_space<vmem>>) attributes {dimension_semantics = [#tpu.dimension_semantics<parallel>], iteration_bounds = array<i64: 2>, scalar_prefetch = 0 : i64, scratch_operands = 0 : i64, tpu.core_type = #tpu.core_type<tc>, window_params = [{transform_indices = @transform_0, window_bounds = array<i64: 1, 18, 72>}, {pipeline_mode = #tpu.pipeline_mode<synchronous>, transform_indices = @transform_1, window_bounds = array<i64: 3, 72, 128>}, {pipeline_mode = #tpu.pipeline_mode<synchronous>, transform_indices = @transform_2, window_bounds = array<i64: 1, 128>}, {transform_indices = @transform_3, window_bounds = array<i64: 1, 16, 128>}]} {
    %cst = arith.constant 0.000000e+00 : f32
    %0 = vector.broadcast %cst : f32 to vector<16x128xf32>
    %c0 = arith.constant 0 : index
    %c0_0 = arith.constant 0 : index
    %c0_1 = arith.constant 0 : index
    %1 = vector.load %arg1[%c0, %c0_0, %c0_1] : memref<1x18x72xbf16, #tpu.memory_space<vmem>>, vector<1x16x72xbf16>
    %2 = vector.shape_cast %1 : vector<1x16x72xbf16> to vector<16x72xbf16>
    %c0_2 = arith.constant 0 : index
    %c0_3 = arith.constant 0 : index
    %c0_4 = arith.constant 0 : index
    %3 = vector.load %arg2[%c0_2, %c0_3, %c0_4] : memref<3x72x128xbf16, #tpu.memory_space<vmem>>, vector<1x72x128xbf16>
    %4 = vector.shape_cast %3 : vector<1x72x128xbf16> to vector<72x128xbf16>
    %cst_5 = arith.constant dense<0.000000e+00> : vector<16x128xf32>
    %5 = tpu.matmul %2, %4, %cst_5 {dimension_numbers = #tpu.dot_dimension_numbers<[1], [0], [0], [1], [0, 0, 1, 1], [], []>} : vector<16x72xbf16>, vector<72x128xbf16>, vector<16x128xf32> -> vector<16x128xf32>
    %6 = arith.addf %0, %5 : vector<16x128xf32>
    %c0_6 = arith.constant 0 : index
    %c1 = arith.constant 1 : index
    %c0_7 = arith.constant 0 : index
    %7 = vector.load %arg1[%c0_6, %c1, %c0_7] : memref<1x18x72xbf16, #tpu.memory_space<vmem>>, vector<1x16x72xbf16>
    %8 = vector.shape_cast %7 : vector<1x16x72xbf16> to vector<16x72xbf16>
    %c1_8 = arith.constant 1 : index
    %c0_9 = arith.constant 0 : index
    %c0_10 = arith.constant 0 : index
    %9 = vector.load %arg2[%c1_8, %c0_9, %c0_10] : memref<3x72x128xbf16, #tpu.memory_space<vmem>>, vector<1x72x128xbf16>
    %10 = vector.shape_cast %9 : vector<1x72x128xbf16> to vector<72x128xbf16>
    %cst_11 = arith.constant dense<0.000000e+00> : vector<16x128xf32>
    %11 = tpu.matmul %8, %10, %cst_11 {dimension_numbers = #tpu.dot_dimension_numbers<[1], [0], [0], [1], [0, 0, 1, 1], [], []>} : vector<16x72xbf16>, vector<72x128xbf16>, vector<16x128xf32> -> vector<16x128xf32>
    %12 = arith.addf %6, %11 : vector<16x128xf32>
    %c0_12 = arith.constant 0 : index
    %c2 = arith.constant 2 : index
    %c0_13 = arith.constant 0 : index
    %13 = vector.load %arg1[%c0_12, %c2, %c0_13] : memref<1x18x72xbf16, #tpu.memory_space<vmem>>, vector<1x16x72xbf16>
    %14 = vector.shape_cast %13 : vector<1x16x72xbf16> to vector<16x72xbf16>
    %c2_14 = arith.constant 2 : index
    %c0_15 = arith.constant 0 : index
    %c0_16 = arith.constant 0 : index
    %15 = vector.load %arg2[%c2_14, %c0_15, %c0_16] : memref<3x72x128xbf16, #tpu.memory_space<vmem>>, vector<1x72x128xbf16>
    %16 = vector.shape_cast %15 : vector<1x72x128xbf16> to vector<72x128xbf16>
    %cst_17 = arith.constant dense<0.000000e+00> : vector<16x128xf32>
    %17 = tpu.matmul %14, %16, %cst_17 {dimension_numbers = #tpu.dot_dimension_numbers<[1], [0], [0], [1], [0, 0, 1, 1], [], []>} : vector<16x72xbf16>, vector<72x128xbf16>, vector<16x128xf32> -> vector<16x128xf32>
    %18 = arith.addf %12, %17 : vector<16x128xf32>
    %c0_18 = arith.constant 0 : index
    %c0_19 = arith.constant 0 : index
    %19 = vector.load %arg3[%c0_18, %c0_19] : memref<1x128xf32, #tpu.memory_space<vmem>>, vector<1x128xf32>
    %20 = vector.broadcast %19 : vector<1x128xf32> to vector<16x128xf32>
    %21 = arith.addf %18, %20 : vector<16x128xf32>
    %22 = arith.negf %21 : vector<16x128xf32>
    %23 = math.exp %22 : vector<16x128xf32>
    %cst_20 = arith.constant 1.000000e+00 : f32
    %24 = vector.broadcast %cst_20 : f32 to vector<16x128xf32>
    %25 = arith.addf %24, %23 : vector<16x128xf32>
    %26 = arith.divf %24, %25 : vector<16x128xf32>
    %27 = arith.mulf %21, %26 : vector<16x128xf32>
    %28 = vector.shape_cast %27 : vector<16x128xf32> to vector<1x16x128xf32>
    %c0_21 = arith.constant 0 : index
    %c0_22 = arith.constant 0 : index
    %c0_23 = arith.constant 0 : index
    %29 = vector.load %arg4[%c0_21, %c0_22, %c0_23] : memref<1x16x128xf32, #tpu.memory_space<vmem>>, vector<1x16x128xf32>
    tpu.vector_store %arg4[%c0_21, %c0_22, %c0_23], %28 {strides = array<i32>} : memref<1x16x128xf32, #tpu.memory_space<vmem>>, vector<1x16x128xf32>,
    return
  }
  func.func @transform_0(%arg0: i32) -> (i32, i32, i32) {
    %c0_i32 = arith.constant 0 : i32
    %c0_i32_0 = arith.constant 0 : i32
    %c0_i32_1 = arith.constant 0 : i32
    return %arg0, %c0_i32, %c0_i32_0 : i32, i32, i32
  }
  func.func @transform_1(%arg0: i32) -> (i32, i32, i32) {
    %c0_i32 = arith.constant 0 : i32
    %c0_i32_0 = arith.constant 0 : i32
    %c0_i32_1 = arith.constant 0 : i32
    %c0_i32_2 = arith.constant 0 : i32
    return %c0_i32, %c0_i32_0, %c0_i32_1 : i32, i32, i32
  }
  func.func @transform_2(%arg0: i32) -> (i32, i32) {
    %c0_i32 = arith.constant 0 : i32
    %c0_i32_0 = arith.constant 0 : i32
    %c0_i32_1 = arith.constant 0 : i32
    return %c0_i32, %c0_i32_0 : i32, i32
  }
  func.func @transform_3(%arg0: i32) -> (i32, i32, i32) {
    %c0_i32 = arith.constant 0 : i32
    %c0_i32_0 = arith.constant 0 : i32
    %c0_i32_1 = arith.constant 0 : i32
    return %arg0, %c0_i32, %c0_i32_0 : i32, i32, i32
  }
}

</mosaic_0001>

<bundles_post_ra>
// kernel: tpu_custom_call.1
= control target key start
LH: loop header
LB: loop body
LE: loop exit
PB: predicated region body
PF: predicated region fallthrough
CT: control target
= control target key end

     0   :  { %8 = vsyncpa [#allocation3], 0  ;;  %s905_s0 = inlined_call_operand.vmem [shape: bf16[2,18,72], index: 0, kind: input, shape index: {}]   ;;  %s906_s1 = inlined_call_operand.hbm [shape: bf16[3,72,128], index: 1, kind: input, shape index: {}]   ;;  %s907_s2 = inlined_call_operand.vmem [shape: f32[1,128], index: 2, kind: input, shape index: {}]   ;;  %s908_s3 = inlined_call_operand.hbm [shape: f32[2,16,128], index: 3, kind: output, shape index: {}]  }
   0x1   :  { %9 = vsyncpa [#allocation4], 0 }
   0x2   :  { %11 = vsyncpa [#allocation4 + $0x1], 0  ;;  %s803_s12 = smov 0   ;;  %s805_s13 = smov 0  }
   0x3   :  { %s807_s14 = smov 0   ;;  %s809_s15 = smov 0  }
   0x4 LB: > { %s824_s16 = sadd.s32 4294967295, %s776_s15   ;;  %s530_s17 = sadd.s32 4294967294, %s776_s15   ;;  %s776_s15 = sphi %s809_s15, %s914_s15   ;;  %s772_s14 = sphi %s807_s14, %s913_s14   ;;  %s768_s13 = sphi %s805_s13, %s912_s13   ;;  %s764_s12 = sphi %s803_s12, %s911_s12  }
   0x5   : > { %s828_s18 = sadd.s32 1, %s776_s15   ;;  %s92_s19 = sadd.s32 1, %s772_s14 }
   0x6   : > { %s89_s20 = ssub.s32 %s776_s15, %s828_s18  ;;  %p102_p0 = scmp.ne.s32.totalorder %s772_s14, %s768_s13 }
   0x7   : > { %p90_p1 = scmp.eq.s32.totalorder %s89_s20, 0  ;;  %p103_p2 = scmp.eq.s32.totalorder %s824_s16, 1 }
   0x8   : > { %p108_p3 = scmp.ne.s32.totalorder %s768_s13, %s764_s12  ;;  %p109_p4 = scmp.eq.s32.totalorder %s530_s17, 1 }
   0x9   : > { %s839_s21 = scalar_select %p90_p1, %s772_s14, %s92_s19  }
   0xa   : > { %p841_p5 = por %p103_p2, %p102_p0  ;;  %p845_p6 = por %p109_p4, %p108_p3 }
   0xb   : > { %p531_p7 = scmp.ge.s32.totalorder %s776_s15, 1  ;;  %p116_p8 = scmp.lt.s32.totalorder %s776_s15, 3 }
   0xc   : > { %p631_p9 = scmp.eq.s32.totalorder %s824_s16, 0  ;;  %s127_s26 = sshll.u32 %s906_s1, 4  ;;  %s128_s26 = int_to_ptr.hbm [resolvable:$true] %s127_s26 }
   0xd   : > { %p117_p10 = pnand %p531_p7, %p116_p8  ;;  %s778_s27 = smov [#allocation2]  }
   0xe   : > { %s129_s28 = sshll.u32 %s778_s27, 4  ;;  %s779_s29 = smov 64   ;;  %s130_s28 = int_to_ptr.vmem [resolvable:$true] %s129_s28 }
   0xf   : > { %p623_p11 = pneg %p117_p10  ;;  %s780_s30 = smov 4  }
  0x10   : > { %156 = sbr.rel (%p117_p10) target bundleno = 226 (0xe2), region = 32 }
  0x11   : > { %p624_p12 = pnand %p631_p9, %p623_p11 }
  0x13   : > { %626 = dma.hbm_to_vmem [thread:$0]  (!%p624_p12), %s128_s26, 1728, %s130_s28, [#allocation3], %s779_s29, %s779_s29, %s780_s30  }
  0x15   : > { %755 = dma.done.wait (%p631_p9), [#allocation3], 1728  }
  0x16   : > { %757 = vsyncadd (%p631_p9), [#allocation3], 4294965568  ;;  %p181_p13 = scmp.lt.s32.totalorder %s824_s16, 1  ;;  %v208_v0 = vld [vmem:[#allocation2 + $0x44] sm:$0xf]  ;;  %vm261_vm0 = vcmask 1043456  }
  0x17   : > { %v197_v1 = vld [vmem:[#allocation2 + $0x20] sm:$0xf]  ;;  %v335_v2 = vld [vmem:[#allocation2 + $0x68] sm:$0xf]  ;;  %v247_v3 = vunpack.c.l.b16 %v208_v0  ;;  %v599_v14 = vld [vmem:[#allocation2 + $0x18] sm:$0xff]  ;;  %vm339_vm2 = vcmask 1046528  }
  0x18   : > { %s182_s4 = scalar_select %p181_p13, %s824_s16, 1  ;;  %v296_v4 = vunpack.c.l.b16 %v197_v1  ;;  %v360_v5 = vunpack.c.l.b16 %v335_v2  ;;  %v603_v13 = vld [vmem:[#allocation2 + $0x3c] sm:$0xff]  ;;  %v602_v18 = vld [vmem:[#allocation2 + $0x34] sm:$0xff]  ;;  %v601_v25 = vld [vmem:[#allocation2 + $0x2c] sm:$0xff]  ;;  %vm217_vm1 = vsmask.f32 7424 }
  0x19   : > { %v252_v6 = vpack.c.b16 %v247_v3, %v247_v3  ;;  %v607_v16 = vld [vmem:[#allocation2 + $0x60] sm:$0xff]  ;;  %v598_v19 = vld [vmem:[#allocation2 + $0x10] sm:$0xff]  ;;  %v606_v22 = vld [vmem:[#allocation2 + $0x58] sm:$0xff]  ;;  %vm257_vm3 = vcmask 588800   ;;  %s178_s11 = sand.u32 1, %s768_s13   ;;  %s608_s19 = sshll.u32 %s824_s16, 4 }
  0x1a   : > { %s616_s5 = smul.u32 12, %s182_s4  ;;  %v301_v7 = vpack.c.b16 %v296_v4, %v296_v4  ;;  %v365_v8 = vpack.c.b16 %v360_v5, %v360_v5  ;;  %v597_v26 = vld [vmem:[#allocation2 + $0x8] sm:$0xff]  ;;  %v605_v30 = vld [vmem:[#allocation2 + $0x50] sm:$0xff]  ;;  %v596_v33 = vld [vmem:[#allocation2] sm:$0xff]  ;;  %s536_s17 = sshll.u32 %s178_s11, 4 }
  0x1b   : > { %v263_v9 = vsel %vm261_vm0, %v252_v6, 0  ;;  %v600_v32 = vld [vmem:[#allocation2 + $0x24] sm:$0xff]  ;;  %v671_v44 = vld [vmem:[%s907_s2] ss:$0 sm:$0xff]  ;;  %s452_s25 = scalar_lea.hbm %s908_s3, %s608_s19  ;;  %s180_s26 = scalar_lea.vmem [#allocation5], %s536_s17 }
  0x1c   : > { %s185_s8 = scalar_lea.vmem %s905_s0, %s616_s5  ;;  %v309_v10 = vsel %vm261_vm0, %v301_v7, 0  ;;  %v374_v11 = vsel %vm261_vm0, %v365_v8, 0  ;;  %268 = vmatpush.bf16.msra.mxu0 %v263_v9  ;;  %v604_v36 = vld [vmem:[#allocation2 + $0x48] sm:$0xff]  ;;  %s453_s27 = sshll.u32 %s180_s26, 4  ;;  %s454_s27 = int_to_ptr.vmem [resolvable:$true] %s453_s27 }
  0x1d   : > { %v198_v12 = vld [vmem:[%s185_s8 + $0x8] sm:$0x1]  ;;  %314 = vmatpush.bf16.msra.mxu1 %v309_v10  ;;  %379 = vmatpush.bf16.msra.mxu2 %v374_v11  ;;  %v610_v17 = vld [vmem:[%s185_s8] sm:$0xff]   ;;  %s455_s28 = sshll.u32 %s452_s25, 4  ;;  %s441_s16 = scalar_lea.sflag [#allocation4], %s178_s11  ;;  %s456_s28 = int_to_ptr.hbm [resolvable:$true] %s455_s28 }
  0x1e   : > { %v214_v15 = vunpack.c.l.b16 %v198_v12  ;;  %v221_v21 = vshll.u32 %v610_v17, 16  ;;  %v613_v23 = vld [vmem:[%s185_s8] sm:$0xf0]  ;;  %v614_v24 = vld [vmem:[%s185_s8] sm:$0xe]  ;;  %v219_v27 = vshrl.u32 %v610_v17, 16 }
  0x1f   : > { %v615_v31 = vor.u32 %v614_v24, %v613_v23  ;;  %s724_s29 = sshra.s32 %s456_s28, 4  ;;  %s730_s6 = scalar_lea.hbm %s908_s3, 32  ;;  %s725_s29 = int_to_ptr.hbm [resolvable:$true] %s724_s29 }
  0x20   : > { %269 = vmatpush.bf16.msra.mxu0 %v603_v13  ;;  %v216_v20 = vpack.c.b16 %v214_v15, %v214_v15  ;;  %v223_v28 = vrot.slane %v221_v21, 1  ;;  %s726_s30 = scalar_lea.hbm %s725_s29, 16  ;;  %p731_p3 = scmp.lt.s32.totalorder %s725_s29, %s908_s3 }
  0x21   : > { %315 = vmatpush.bf16.msra.mxu1 %v599_v14  ;;  %380 = vmatpush.bf16.msra.mxu2 %v607_v16  ;;  %v340_v37 = vrot.slane %v615_v31, 1  ;;  %p727_p0 = scmp.ne.s32.totalorder %s725_s29, %s726_s30  ;;  %p732_p4 = scmp.lt.s32.totalorder %s730_s6, %s726_s30 }
  0x22   : > { %v226_v29 = vshll.u32 %v216_v20, 16  ;;  %v224_v34 = vor.u32 %v223_v28, %v219_v27  ;;  %v341_v38 = vrot.slane %v216_v20, 1 }
  0x23   : > { %p728_p1 = pnand %p727_p0, %p841_p5  ;;  %p733_p7 = por %p732_p4, %p731_p3 }
  0x24   : > { %270 = vmatpush.bf16.msra.mxu0 %v602_v18  ;;  %v228_v35 = vrot.slane %v226_v29, 1  ;;  %v342_v40 = vsel %vm339_vm2, %v340_v37, %v341_v38 }
  0x25   : > { %316 = vmatpush.bf16.msra.mxu1 %v598_v19  ;;  %381 = vmatpush.bf16.msra.mxu2 %v606_v22  ;;  %p729_p2 = pneg %p728_p1 }
  0x26   : > { %v229_v39 = vsel %vm217_vm1, %v224_v34, %v228_v35 }
  0x27   : > { %p734_p8 = pnand %p733_p7, %p729_p2 }
  0x28   : > { %271 = vmatpush.bf16.msra.mxu0 %v601_v25 }
  0x29   : > { %317 = vmatpush.bf16.msra.mxu1 %v597_v26  ;;  %382 = vmatpush.bf16.msra.mxu2 %v605_v30 }
  0x2c   : > { %272 = vmatpush.bf16.msra.mxu0 %v600_v32 }
  0x2d   : > { %318 = vmatpush.bf16.msra.mxu1 %v596_v33  ;;  %383 = vmatpush.bf16.msra.mxu2 %v604_v36 }
  0x2f   : > { %554 = vmatmul.msk.bf16.vlgmr.msra.gmra.mxu0 %vm257_vm3, %v229_v39 }
  0x30   : > { %571 = vmatmul.msk.bf16.vlgmr.msra.gmra.mxu1 %vm257_vm3, %v610_v17  ;;  %588 = vmatmul.msk.bf16.vlgmr.msra.gmra.mxu2 %vm257_vm3, %v342_v40 }
  0xac   : > { %v274_v41 = vpop.f32.mrf.mxu0 }
  0xad   : > { %v320_v42 = vpop.f32.mrf.mxu1 }
  0xae   : > { %v321_v43 = vadd.f32 %v320_v42, %v274_v41 }
  0xb3   : > { %v385_v45 = vpop.f32.mrf.mxu2 }
  0xb4   : > { %v390_v46 = vadd.f32 %v385_v45, %v321_v43  ;;  %v276_v48 = vpop.f32.mrf.mxu0 }
  0xb5   : > { %v322_v49 = vpop.f32.mrf.mxu1 }
  0xb6   : > { %v396_v47 = vadd.f32 %v671_v44, %v390_v46  ;;  %v323_v51 = vadd.f32 %v322_v49, %v276_v48 }
  0xb8   : > { %v589_v50 = vmul.f32 -1.442695, %v396_v47 }
  0xba   : > { %672 = vpow2.f32 %v589_v50 }
  0xbb   : > { %v387_v52 = vpop.f32.mrf.mxu2 }
  0xbc   : > { %v391_v53 = vadd.f32 %v387_v52, %v323_v51 }
  0xbe   : > { %v397_v54 = vadd.f32 %v671_v44, %v391_v53 }
  0xc0   : > { %v673_v55 = vpop.eup %672  ;;  %v590_v56 = vmul.f32 -1.442695, %v397_v54 }
  0xc1   : > { %v404_v57 = vadd.f32 1.0, %v673_v55 }
  0xc2   : > { %674 = vpow2.f32 %v590_v56 }
  0xc3   : > { %676 = vrcp.f32 %v404_v57  ;;  %v417_v63 = vand.u32 2147483648, %v404_v57  ;;  %v415_v1 = vand.u32 2147483647, %v404_v57  ;;  %vm411_vm5 = vweird.f32 %v404_v57 }
  0xc5   : > { %v418_v4 = vor.u32 1.1754944e-38, %v417_v63  ;;  %vm416_vm7 = vcmp.eq.f32.partialorder %v415_v1, 8.507059e+37 }
  0xc8   : > { %v675_v58 = vpop.eup %674 }
  0xc9   : > { %v677_v59 = vpop.eup %676  ;;  %v405_v60 = vadd.f32 1.0, %v675_v58 }
  0xca   : > { %v407_v61 = vmul.f32 %v677_v59, %v404_v57  ;;  %vm412_vm4 = vweird.f32 %v677_v59 }
  0xcb   : > { %678 = vrcp.f32 %v405_v60  ;;  %vm413_vm6 = vmor %vm411_vm5, %vm412_vm4  ;;  %v432_v10 = vand.u32 2147483648, %v405_v60  ;;  %v430_v12 = vand.u32 2147483647, %v405_v60  ;;  %vm426_vm9 = vweird.f32 %v405_v60 }
  0xcc   : > { %v408_v62 = vsub.f32 1.0, %v407_v61 }
  0xcd   : > { %v433_v14 = vor.u32 1.1754944e-38, %v432_v10  ;;  %vm431_vm11 = vcmp.eq.f32.partialorder %v430_v12, 8.507059e+37 }
  0xce   : > { %v409_v0 = vmul.f32 %v677_v59, %v408_v62 }
  0xd0   : > { %v410_v2 = vadd.f32 %v677_v59, %v409_v0 }
  0xd1   : > { %v679_v3 = vpop.eup %678 }
  0xd2   : > { %v414_v5 = vsel %vm413_vm6, %v677_v59, %v410_v2  ;;  %v422_v6 = vmul.f32 %v679_v3, %v405_v60  ;;  %vm427_vm8 = vweird.f32 %v679_v3 }
  0xd3   : > { %v419_v7 = vsel %vm416_vm7, %v418_v4, %v414_v5  ;;  %vm428_vm10 = vmor %vm426_vm9, %vm427_vm8 }
  0xd4   : > { %v436_v8 = vmul.f32 %v419_v7, %v396_v47  ;;  %v423_v9 = vsub.f32 1.0, %v422_v6 }
  0xd6   : > { %438 = vst [vmem:[%s180_s26] sm:$0xff] %v436_v8  ;;  %v424_v11 = vmul.f32 %v679_v3, %v423_v9 }
  0xd8   : > { %v425_v13 = vadd.f32 %v679_v3, %v424_v11 }
  0xda   : > { %v429_v15 = vsel %vm428_vm10, %v679_v3, %v425_v13 }
  0xdb   : > { %v434_v16 = vsel %vm431_vm11, %v433_v14, %v429_v15 }
  0xdc   : > { %v437_v17 = vmul.f32 %v434_v16, %v397_v54 }
  0xde   : > { %439 = vst [vmem:[%s180_s26 + $0x8] sm:$0xff] %v437_v17 }
  0xdf   : > { %737 = shalt.err (!%p734_p8)
}
  0xe0   : > { %s781_s9 = smov 128   ;;  %s782_s10 = smov 8  }
  0xe1   : > { %621 = dma.vmem_to_hbm [thread:$0]  (%p841_p5), %s454_s27, 256, %s456_s28, %s441_s16, %s781_s9, %s781_s9, %s782_s10  }
  0xe2 PF: > { %p633_p9 = scmp.ge.s32.totalorder %s776_s15, 2  ;;  %s470_s11 = sand.u32 1, %s764_s12  }
  0xe3   : > { %s471_s17 = scalar_lea.sflag [#allocation4], %s470_s11 }
  0xe4   : > { %p628_p10 = pnand %p633_p9, %p845_p6 }
  0xe6   : > { %p629_p11 = pneg %p628_p10 }
  0xe8   : > { %759 = dma.done.wait (%p629_p11), %s471_s17, 256  }
  0xe9   : > { %761 = vsyncadd (%p629_p11), %s471_s17, 4294967040  ;;  %p14_p12 = scmp.ge.s32.totalorder %s828_s18, 4   ;;  %s911_s12 = smov %s768_s13 }
  0xea   : > { %s912_s13 = smov %s772_s14  ;;  %s913_s14 = smov %s839_s21 }
  0xeb   : > { %s914_s15 = smov %s828_s18  ;;  %16 = sbr.rel (!%p14_p12) target bundleno = 4 (0x4), region = 74 }
  0xf0   :  { %477 = vsyncpa [#allocation3], 1 }
  0xf1   :  { %479 = vsyncpa [#allocation3 + $0x1], 1 }
  0xf2   :  { %480 = vsyncpa [#allocation4], 1 }
  0xf3   :  { %482 = vsyncpa [#allocation4 + $0x1], 1 }

</bundles_post_ra>
